<compile_context>
chip_gen: v7x
topology: tpu7x:2x2x1
jax: 0.10.0
libtpu: 0.0.40
codegen_flags: <defaults>
</compile_context>

<pallas_src>
import jax
import jax.numpy as jnp
from jax.experimental import pallas as pl
from jax.experimental.pallas import tpu as pltpu


_TARGET_OUT_TILE_BYTES = 4 * 1024 * 1024  # ~4 MiB output tile (x2 double buffer)


def _largest_divisor_leq(n, cap, pred):
    """Largest t <= cap dividing n with pred(t); falls back to n (full extent)."""
    cap = max(1, min(int(cap), n))
    for t in range(cap, 0, -1):
        if n % t == 0 and pred(t):
            return t
    # Full extent always satisfies Pallas' (8,128) block constraints.
    # TODO(synk): for very large L with no small valid divisor this falls back
    # to an untiled axis; such shapes may need padding of L.
    return n


def _outer_concat_aligned_kernel(x1_ref, x2_ref, out_ref):
    # x1_ref: (1, TI, D1), x2_ref: (1, TJ, D2), out_ref: (1, TI, TJ, D1+D2)
    # D1 and D2 are multiples of 128 -> both sliced stores are lane-aligned and
    # unmasked; no concatenate / extra VMEM copy of the output tile.
    _, TI, D1 = x1_ref.shape
    _, TJ, D2 = x2_ref.shape
    x1 = x1_ref[...]
    x2 = x2_ref[...]
    out_ref[:, :, :, :D1] = jnp.broadcast_to(x1[:, :, None, :], (1, TI, TJ, D1))
    out_ref[:, :, :, D1:] = jnp.broadcast_to(x2[:, None, :, :], (1, TI, TJ, D2))


def _outer_concat_flat_kernel(x1_ref, x2_ref, out_ref):
    # x1_ref: (1, TI, D1), x2_ref: (1, TJ, D2), out_ref: (1, TI, TJ*(D1+D2))
    # Feature width is not 128-aligned, so build one lane-flattened slab and do
    # a single full-width (multiple-of-128 lanes) unmasked store.
    _, TI, D1 = x1_ref.shape
    _, TJ, D2 = x2_ref.shape
    D = D1 + D2
    x1 = x1_ref[...]
    x2 = x2_ref[...]
    x1_b = jnp.broadcast_to(x1[:, :, None, :], (1, TI, TJ, D1))
    x2_b = jnp.broadcast_to(x2[:, None, :, :], (1, TI, TJ, D2))
    slab = jnp.concatenate((x1_b, x2_b), axis=-1).reshape(1, TI, TJ * D)
    out_ref[...] = slab


def outer_concat(x1, x2):
    B, L, D1 = x1.shape
    B2, L2, D2 = x2.shape
    assert B == B2 and L == L2, "x1 and x2 must share batch and seq dims"

    out_dtype = jnp.result_type(x1.dtype, x2.dtype)
    x1 = x1.astype(out_dtype)
    x2 = x2.astype(out_dtype)

    D = D1 + D2
    itemsize = jnp.dtype(out_dtype).itemsize
    aligned = (D1 % 128 == 0) and (D2 % 128 == 0)

    # Tile over the i (query-like) axis: sublane-facing dim of x1 blocks and of
    # the output block -> must be a multiple of 8 or the full extent.
    TI = _largest_divisor_leq(L, 128, lambda t: t % 8 == 0 or t == L)

    # Tile over the j axis, sized so the output tile is ~_TARGET_OUT_TILE_BYTES.
    tj_cap = max(1, _TARGET_OUT_TILE_BYTES // max(1, TI * D * itemsize))
    if aligned:
        tj_pred = lambda t: t % 8 == 0 or t == L
    else:
        # second-minor of x2 block (mult of 8) AND lane-dense flattened store.
        tj_pred = lambda t: t == L or (t % 8 == 0 and (t * D) % 128 == 0)
    TJ = _largest_divisor_leq(L, tj_cap, tj_pred)

    grid = (B, L // TI, L // TJ)  # j innermost: x1 tile resident across j loop

    in_specs = [
        pl.BlockSpec((1, TI, D1), lambda b, i, j: (b, i, 0)),  # indep. of j
        pl.BlockSpec((1, TJ, D2), lambda b, i, j: (b, j, 0)),  # indep. of i
    ]
    compiler_params = pltpu.CompilerParams(
        dimension_semantics=("parallel", "parallel", "parallel"),
    )

    if aligned:
        return pl.pallas_call(
            _outer_concat_aligned_kernel,
            out_shape=jax.ShapeDtypeStruct((B, L, L, D), out_dtype),
            grid_spec=pltpu.PrefetchScalarGridSpec(
                num_scalar_prefetch=0,
                grid=grid,
                in_specs=in_specs,
                out_specs=pl.BlockSpec((1, TI, TJ, D), lambda b, i, j: (b, i, j, 0)),
            ),
            compiler_params=compiler_params,
        )(x1, x2)

    out_flat = pl.pallas_call(
        _outer_concat_flat_kernel,
        out_shape=jax.ShapeDtypeStruct((B, L, L * D), out_dtype),
        grid_spec=pltpu.PrefetchScalarGridSpec(
            num_scalar_prefetch=0,
            grid=grid,
            in_specs=in_specs,
            out_specs=pl.BlockSpec((1, TI, TJ * D), lambda b, i, j: (b, i, j)),
        ),
        compiler_params=compiler_params,
    )(x1, x2)
    # Row-major reshape back to (B, L, L, D): column (j*D + d) -> (j, d).
    return out_flat.reshape(B, L, L, D)


def _reference(x1, x2):
    B, L, D1 = x1.shape
    D2 = x2.shape[2]
    out_dtype = jnp.result_type(x1.dtype, x2.dtype)
    return jnp.concatenate(
        (
            jnp.broadcast_to(x1.astype(out_dtype)[:, :, None, :], (B, L, L, D1)),
            jnp.broadcast_to(x2.astype(out_dtype)[:, None, :, :], (B, L, L, D2)),
        ),
        axis=-1,
    )


if __name__ == "__main__":
    key = jax.random.PRNGKey(0)
    k1, k2, k3, k4 = jax.random.split(key, 4)

    # Unaligned feature width -> lane-flattened path.
    B, L, D1, D2 = 2, 8, 32, 32
    x1 = jax.random.normal(k1, (B, L, D1), dtype=jnp.float32)
    x2 = jax.random.normal(k2, (B, L, D2), dtype=jnp.float32)
    out = jax.block_until_ready(outer_concat(x1, x2))
    ref = _reference(x1, x2)
    assert out.shape == (B, L, L, D1 + D2), out.shape
    assert jnp.allclose(out, ref), "mismatch vs reference (flat path)"

    # 128-aligned feature widths -> direct sliced-store path.
    Ba, La, Da1, Da2 = 2, 8, 128, 128
    y1 = jax.random.normal(k3, (Ba, La, Da1), dtype=jnp.float32)
    y2 = jax.random.normal(k4, (Ba, La, Da2), dtype=jnp.float32)
    out_a = jax.block_until_ready(outer_concat(y1, y2))
    ref_a = _reference(y1, y2)
    assert out_a.shape == (Ba, La, La, Da1 + Da2), out_a.shape
    assert jnp.allclose(out_a, ref_a), "mismatch vs reference (aligned path)"

    print("KERNEL_OK")
</pallas_src>

<mosaic_0001>
module attributes {stable_mosaic.version = 11 : i64} {
  func.func @_outer_concat_flat_kernel(%arg0: i32, %arg1: i32, %arg2: i32, %arg3: memref<1x8x32xf32, #tpu.memory_space<vmem>>, %arg4: memref<1x8x32xf32, #tpu.memory_space<vmem>>, %arg5: memref<1x8x512xf32, #tpu.memory_space<vmem>>) attributes {dimension_semantics = [#tpu.dimension_semantics<parallel>, #tpu.dimension_semantics<parallel>, #tpu.dimension_semantics<parallel>], iteration_bounds = array<i64: 2, 1, 1>, scalar_prefetch = 0 : i64, scratch_operands = 0 : i64, tpu.core_type = #tpu.core_type<tc>, window_params = [{transform_indices = @transform_0, window_bounds = array<i64: 1, 8, 32>}, {transform_indices = @transform_1, window_bounds = array<i64: 1, 8, 32>}, {transform_indices = @transform_2, window_bounds = array<i64: 1, 8, 512>}]} {
    %c0 = arith.constant 0 : index
    %c0_0 = arith.constant 0 : index
    %c0_1 = arith.constant 0 : index
    %0 = vector.load %arg3[%c0, %c0_0, %c0_1] : memref<1x8x32xf32, #tpu.memory_space<vmem>>, vector<1x8x32xf32>
    %c0_2 = arith.constant 0 : index
    %c0_3 = arith.constant 0 : index
    %c0_4 = arith.constant 0 : index
    %1 = vector.load %arg4[%c0_2, %c0_3, %c0_4] : memref<1x8x32xf32, #tpu.memory_space<vmem>>, vector<1x8x32xf32>
    %2 = vector.shape_cast %0 : vector<1x8x32xf32> to vector<1x8x1x32xf32>
    %3 = vector.shape_cast %2 : vector<1x8x1x32xf32> to vector<1x8x1x32xf32>
    %4 = vector.broadcast %3 : vector<1x8x1x32xf32> to vector<1x8x8x32xf32>
    %5 = vector.shape_cast %1 : vector<1x8x32xf32> to vector<1x1x8x32xf32>
    %6 = vector.shape_cast %5 : vector<1x1x8x32xf32> to vector<1x1x8x32xf32>
    %7 = vector.broadcast %6 : vector<1x1x8x32xf32> to vector<1x8x8x32xf32>
    %8 = tpu.concatenate %4, %7 in 3 : vector<1x8x8x32xf32>, vector<1x8x8x32xf32> -> vector<1x8x8x64xf32>
    %9 = vector.shape_cast %8 : vector<1x8x8x64xf32> to vector<1x8x512xf32>
    %c0_5 = arith.constant 0 : index
    %c0_6 = arith.constant 0 : index
    %c0_7 = arith.constant 0 : index
    %10 = vector.load %arg5[%c0_5, %c0_6, %c0_7] : memref<1x8x512xf32, #tpu.memory_space<vmem>>, vector<1x8x512xf32>
    tpu.vector_store %arg5[%c0_5, %c0_6, %c0_7], %9 {strides = array<i32>} : memref<1x8x512xf32, #tpu.memory_space<vmem>>, vector<1x8x512xf32>,
    return
  }
  func.func @transform_0(%arg0: i32, %arg1: i32, %arg2: i32) -> (i32, i32, i32) {
    %c0_i32 = arith.constant 0 : i32
    %c0_i32_0 = arith.constant 0 : i32
    return %arg0, %arg1, %c0_i32 : i32, i32, i32
  }
  func.func @transform_1(%arg0: i32, %arg1: i32, %arg2: i32) -> (i32, i32, i32) {
    %c0_i32 = arith.constant 0 : i32
    %c0_i32_0 = arith.constant 0 : i32
    return %arg0, %arg2, %c0_i32 : i32, i32, i32
  }
  func.func @transform_2(%arg0: i32, %arg1: i32, %arg2: i32) -> (i32, i32, i32) {
    %c0_i32 = arith.constant 0 : i32
    return %arg0, %arg1, %arg2 : i32, i32, i32
  }
}

</mosaic_0001>

<bundles_post_ra>
// kernel: tpu_custom_call.1
= control target key start
LH: loop header
LB: loop body
LE: loop exit
PB: predicated region body
PF: predicated region fallthrough
CT: control target
= control target key end

     0   :  { %7 = vsyncpa [#allocation3], 0  ;;  %s1113_s0 = inlined_call_operand.hbm [shape: f32[2,8,32], index: 0, kind: input, shape index: {}]   ;;  %s1114_s1 = inlined_call_operand.hbm [shape: f32[2,8,32], index: 1, kind: input, shape index: {}]   ;;  %s1115_s2 = inlined_call_operand.hbm [shape: f32[2,8,512], index: 2, kind: output, shape index: {}]  }
   0x1   :  { %9 = vsyncpa [#allocation3 + $0x1], 0 }
   0x2   :  { %10 = vsyncpa [#allocation6], 0 }
   0x3   :  { %12 = vsyncpa [#allocation6 + $0x1], 0 }
   0x4   :  { %13 = vsyncpa [#allocation4], 0 }
   0x5   :  { %15 = vsyncpa [#allocation4 + $0x1], 0  ;;  %s884_s9 = smov 0   ;;  %s886_s10 = smov 0  }
   0x6   :  { %s888_s11 = smov 0   ;;  %s890_s12 = smov 0  }
   0x7   :  { %s892_s13 = smov 0   ;;  %s894_s14 = smov 0  }
   0x8 LB: > { %s622_s15 = sadd.s32 4294967295, %s859_s14   ;;  %s623_s16 = sadd.s32 4294967294, %s859_s14   ;;  %s859_s14 = sphi %s894_s14, %s21_s14   ;;  %s855_s13 = sphi %s892_s13, %s1135_s13   ;;  %s851_s12 = sphi %s890_s12, %s1134_s12   ;;  %s847_s11 = sphi %s888_s11, %s1133_s11   ;;  %s843_s10 = sphi %s886_s10, %s1132_s10   ;;  %s839_s9 = sphi %s884_s9, %s1131_s9  }
   0x9   : > { %s40_s17 = sadd.s32 1, %s855_s13  ;;  %s49_s18 = sadd.s32 1, %s847_s11 }
   0xa   : > { %p42_p0 = scmp.ge.s32.totalorder %s40_s17, 2  ;;  %p56_p1 = scmp.ne.s32.totalorder %s847_s11, %s843_s10 }
   0xb   : > { %p57_p2 = scmp.eq.s32.totalorder %s859_s14, 0  ;;  %p62_p3 = scmp.ne.s32.totalorder %s843_s10, %s839_s9 }
   0xc   : > { %s1137_s17 = smov (%p42_p0, %s40_s17), 0  ;;  %p63_p5 = scmp.eq.s32.totalorder %s622_s15, 0 }
   0xd   : > { %p925_p4 = por %p57_p2, %p56_p1  ;;  %s44_s20 = ssub.s32 %s855_s13, %s1137_s17 }
   0xe   : > { %p118_p6 = scmp.eq.s32.totalorder %s622_s15, 1  ;;  %p47_p7 = scmp.eq.s32.totalorder %s44_s20, 0 }
   0xf   : > { %p931_p8 = por %p63_p5, %p62_p3  ;;  %p124_p10 = scmp.eq.s32.totalorder %s623_s16, 1 }
  0x10   : > { %p935_p9 = por %p118_p6, %p56_p1  ;;  %p657_p13 = scmp.lt.s32.totalorder %s859_s14, 2 }
  0x11   : > { %s1119_s21 = scalar_select %p931_p8, 1, 0 }
  0x12   : > { %s1120_s22 = scalar_select %p935_p9, 1, 0 }
  0x13   : > { %s940_s23 = scalar_select %p47_p7, %s847_s11, %s49_s18  }
  0x14   : > { %p942_p11 = por %p124_p10, %p62_p3  ;;  %s949_s25 = sand.u32 1, %s847_s11  }
  0x15   : > { %s626_s26 = sshll.u32 %s949_s25, 3  ;;  %s627_s27 = sshll.u32 %s855_s13, 7 }
  0x16   : > { %s1121_s24 = scalar_select %p942_p11, 1, 0 }
  0x17   : > { %s958_s30 = scalar_lea.hbm %s1113_s0, %s627_s27  ;;  %s148_s3 = scalar_lea.vmem [#allocation2], %s626_s26 }
  0x18   : > { %s156_s4 = sshll.u32 %s148_s3, 4  ;;  %p966_p0 = pnand %p657_p13, %p925_p4  ;;  %s962_s4 = int_to_ptr.vmem [resolvable:$true] %s156_s4 }
  0x19   : > { %s145_s6 = scalar_lea.sflag [#allocation3], %s949_s25  ;;  %s713_s7 = scalar_lea.hbm %s958_s30, 128 }
  0x1a   : > { %p714_p3 = scmp.ne.s32.totalorder %s958_s30, %s713_s7  ;;  %p715_p5 = pneg %p966_p0 }
  0x1b   : > { %s718_s16 = scalar_lea.hbm %s1113_s0, 256  ;;  %p719_p4 = scmp.lt.u32.totalorder %s958_s30, %s1113_s0 }
  0x1c   : > { %p716_p6 = pnand %p715_p5, %p714_p3  ;;  %p720_p10 = scmp.lt.u32.totalorder %s718_s16, %s713_s7 }
  0x1d   : > { %p722_p12 = scmp.lt.u32.totalorder %s713_s7, %s958_s30 }
  0x1e   : > { %p717_p7 = pneg %p716_p6  ;;  %p721_p13 = por %p720_p10, %p719_p4 }
  0x20   : > { %p723_p1 = por %p722_p12, %p721_p13 }
  0x22   : > { %p724_p2 = pnand %p723_p1, %p717_p7 }
  0x24   : > { %727 = shalt.err (!%p724_p2)
}
  0x25   : > { %s728_s20 = scalar_lea.vmem %s962_s4, 128  ;;  %s861_s28 = smov [#allocation2]  }
  0x26   : > { %p729_p3 = scmp.ne.s32.totalorder %s962_s4, %s728_s20  ;;  %s733_s29 = sshll.u32 %s861_s28, 4  ;;  %s734_s29 = int_to_ptr.vmem [resolvable:$false] %s733_s29 }
  0x27   : > { %s735_s3 = scalar_lea.vmem %s734_s29, 256  ;;  %p736_p9 = scmp.lt.s32.totalorder %s962_s4, %s734_s29 }
  0x28   : > { %p731_p6 = pnand %p729_p3, %p715_p5  ;;  %p737_p4 = scmp.lt.s32.totalorder %s735_s3, %s728_s20 }
  0x2a   : > { %p732_p11 = pneg %p731_p6  ;;  %p738_p10 = por %p737_p4, %p736_p9 }
  0x2c   : > { %p739_p12 = pnand %p738_p10, %p732_p11 }
  0x2e   : > { %742 = shalt.err (!%p739_p12)
}
  0x2f   : > { %649 = dma.hbm_to_vmem [thread:$0]  (!%p966_p0), %s958_s30, 128, %s962_s4, %s145_s6  }
  0x30   : > { %p1123_p1 = scmp.lt.s32.totalorder %s859_s14, 3  ;;  %p1124_p2 = scmp.ge.s32.totalorder %s859_s14, 1 }
  0x31   : > { %s1011_s16 = scalar_lea.hbm %s1114_s1, %s627_s27  ;;  %s167_s18 = scalar_lea.vmem [#allocation5], %s626_s26 }
  0x32   : > { %p1002_p7 = pnand %p1124_p2, %p1123_p1  ;;  %s175_s19 = sshll.u32 %s167_s18, 4  ;;  %s176_s19 = int_to_ptr.vmem [resolvable:$true] %s175_s19 }
  0x33   : > { %s164_s30 = scalar_lea.sflag [#allocation6], %s949_s25  ;;  %s743_s4 = scalar_lea.hbm %s1011_s16, 128 }
  0x34   : > { %s1125_s7 = scalar_select %p1002_p7, 1, 0 }
  0x35   : > { %p744_p9 = scmp.ne.s32.totalorder %s1011_s16, %s743_s4  ;;  %s748_s27 = scalar_lea.hbm %s1114_s1, 256 }
  0x36   : > { %p749_p3 = scmp.lt.u32.totalorder %s1011_s16, %s1114_s1  ;;  %p750_p6 = scmp.lt.u32.totalorder %s748_s27, %s743_s4 }
  0x37   : > { %p746_p11 = pnand %p744_p9, %p715_p5  ;;  %p752_p10 = scmp.lt.u32.totalorder %s743_s4, %s1011_s16 }
  0x38   : > { %p751_p4 = por %p750_p6, %p749_p3 }
  0x39   : > { %p747_p13 = pneg %p746_p11 }
  0x3a   : > { %p753_p12 = por %p752_p10, %p751_p4 }
  0x3c   : > { %p754_p1 = pnand %p753_p12, %p747_p13 }
  0x3e   : > { %757 = shalt.err (!%p754_p1)
}
  0x3f   : > { %s758_s25 = scalar_lea.vmem %s176_s19, 128  ;;  %s862_s26 = smov [#allocation5]  }
  0x40   : > { %p759_p2 = scmp.ne.s32.totalorder %s176_s19, %s758_s25  ;;  %s763_s3 = sshll.u32 %s862_s26, 4  ;;  %s764_s3 = int_to_ptr.vmem [resolvable:$false] %s763_s3 }
  0x41   : > { %s765_s8 = scalar_lea.vmem %s764_s3, 256  ;;  %p766_p8 = scmp.lt.s32.totalorder %s176_s19, %s764_s3 }
  0x42   : > { %p761_p9 = pnand %p759_p2, %p715_p5  ;;  %p767_p7 = scmp.lt.s32.totalorder %s765_s8, %s758_s25 }
  0x44   : > { %p762_p11 = pneg %p761_p9  ;;  %p768_p3 = por %p767_p7, %p766_p8 }
  0x46   : > { %p769_p6 = pnand %p768_p3, %p762_p11 }
  0x48   : > { %772 = shalt.err (!%p769_p6)
}
  0x49   : > { %652 = dma.hbm_to_vmem [thread:$0]  (!%p966_p0), %s1011_s16, 128, %s176_s19, %s164_s30  }
  0x4a   : > { %p1126_p13 = scmp.ne.s32.totalorder %s1125_s7, 0 }
  0x4b   : > { %s1038_s15 = sand.u32 (!%p1126_p13), 1, %s843_s10   ;;  %p1127_p5 = scmp.ne.s32.totalorder (!%p1126_p13), %s1119_s21, 0 }
  0x4c   : > { %184 = sbr.rel (%p1126_p13) target bundleno = 349 (0x15d), region = 28  ;;  %s631_s18 = sshll.u32 (!%p1126_p13), %s1038_s15, 3 }
  0x4d   : > { %s187_s4 = scalar_lea.sflag (!%p1126_p13), [#allocation3], %s1038_s15  ;;  %s190_s6 = scalar_lea.vmem (!%p1126_p13), [#allocation2], %s631_s18 }
  0x53   : > { %826 = dma.done.wait (%p1127_p5), %s187_s4, 128  }
  0x54   : > { %828 = vsyncadd (%p1127_p5), %s187_s4, 4294967168  ;;  %s196_s5 = scalar_lea.sflag [#allocation6], %s1038_s15  ;;  %s199_s16 = scalar_lea.vmem [#allocation5], %s631_s18 }
  0x55   : > { %830 = dma.done.wait (%p1127_p5), %s196_s5, 128  }
  0x56   : > { %832 = vsyncadd (%p1127_p5), %s196_s5, 4294967168  ;;  %v227_v0 = vld [vmem:[%s199_s16] sm:$0xff]  ;;  %s863_s7 = smov 32   ;;  %v864_v1 = vmov 1966171168   ;;  %v233_v3 = vlaneseq  ;;  %v226_v6 = vld [vmem:[%s190_s6] sm:$0xff] }
  0x57   : > { %319 = vrot.lane.b32.xlu0 %v227_v0, %s863_s7  ;;  %v231_v2 = vunpack.c.l.s4 %v864_v1  ;;  %v229_v8 = vcombine.high %v226_v6, %v226_v6  ;;  %v865_v17 = vmov 1983009808   ;;  %v866_v19 = vmov 1934713408   ;;  %s867_s21 = smov 64   ;;  %s633_s19 = sshll.u32 %s1038_s15, 5 }
  0x58   : > { %v234_v5 = vshrl.u32 %v233_v3, 7  ;;  %v334_v18 = vunpack.c.l.s4 %v865_v17  ;;  %v398_v20 = vunpack.c.l.s4 %v866_v19  ;;  %vm322_vm0 = vcmask 261120   ;;  %s639_s30 = sshll.u32 %s851_s12, 9  ;;  %s224_s20 = scalar_lea.vmem [#allocation7], %s633_s19 }
  0x59   : > { %v232_v4 = vunpack.c.0.s8 %v231_v2  ;;  %vm483_vm1 = vcmask 523264   ;;  %s511_s27 = sshll.u32 %s224_s20, 4  ;;  %s1064_s25 = scalar_lea.hbm %s1115_s2, %s639_s30  ;;  %s1066_s27 = int_to_ptr.vmem [resolvable:$true] %s511_s27 }
  0x5a   : > { %v280_v23 = vsub.s32 0, %v234_v5  ;;  %v335_v26 = vunpack.c.0.s8 %v334_v18  ;;  %v399_v27 = vunpack.c.0.s8 %v398_v20  ;;  %s493_s12 = scalar_lea.sflag [#allocation4], %s1038_s15  ;;  %s773_s26 = scalar_lea.vmem %s1066_s27, 512 }
  0x5b   : > { %v235_v7 = vsub.s32 %v232_v4, %v234_v5  ;;  %p774_p8 = scmp.ne.s32.totalorder %s1066_s27, %s773_s26  ;;  %p1128_p0 = scmp.ne.s32.totalorder %s1120_s22, 0 }
  0x5c   : > { %v338_v37 = vsub.s32 %v335_v26, %v234_v5  ;;  %v402_v38 = vsub.s32 %v399_v27, %v234_v5  ;;  %s868_s3 = smov [#allocation7]  }
  0x5d   : > { %v236_v9 = vrot.slane %v226_v6, %v235_v7  ;;  %v243_v10 = vrot.slane %v229_v8, %v235_v7  ;;  %p775_p7 = pnand %p774_p8, %p1128_p0  ;;  %s777_s8 = sshll.u32 %s868_s3, 4  ;;  %s778_s8 = int_to_ptr.vmem [resolvable:$false] %s777_s8 }
  0x5e   : > { %s779_s18 = scalar_lea.vmem %s778_s8, 1024  ;;  %p780_p10 = scmp.lt.s32.totalorder %s1066_s27, %s778_s8 }
  0x5f   : > { %v244_v11 = vcombine.high %v236_v9, %v236_v9  ;;  %v245_v12 = vcombine.high %v243_v10, %v243_v10  ;;  %v252_v13 = vrot.slane %v236_v9, %v235_v7  ;;  %v259_v15 = vrot.slane %v243_v10, %v235_v7  ;;  %p776_p4 = pneg %p775_p7  ;;  %p781_p12 = scmp.lt.s32.totalorder %s779_s18, %s773_s26 }
  0x61   : > { %v266_v14 = vrot.slane %v244_v11, %v235_v7  ;;  %v273_v16 = vrot.slane %v245_v12, %v235_v7  ;;  %v274_v21 = vcombine.high %v252_v13, %v252_v13  ;;  %v275_v24 = vcombine.high %v259_v15, %v259_v15  ;;  %p782_p1 = por %p781_p12, %p780_p10 }
  0x62   : > { %v281_v28 = vrot.slane %v252_v13, %v280_v23  ;;  %v297_v32 = vrot.slane %v259_v15, %v280_v23 }
  0x63   : > { %v276_v22 = vcombine.high %v266_v14, %v266_v14  ;;  %v277_v25 = vcombine.high %v273_v16, %v273_v16  ;;  %v285_v29 = vrot.slane %v266_v14, %v280_v23  ;;  %v289_v30 = vrot.slane %v274_v21, %v280_v23  ;;  %p783_p2 = pnand %p782_p1, %p776_p4 }
  0x64   : > { %v301_v33 = vrot.slane %v273_v16, %v280_v23  ;;  %v305_v34 = vrot.slane %v275_v24, %v280_v23 }
  0x65   : > { %v293_v31 = vrot.slane %v276_v22, %v280_v23  ;;  %v309_v35 = vrot.slane %v277_v25, %v280_v23 }
  0xc9   : > { %v320_v36 = vpop.permute.xlu0 %319 }
  0xca   : > { %v323_v39 = vsel %vm322_vm0, %v281_v28, %v320_v36  ;;  %v324_v40 = vsel %vm322_vm0, %v285_v29, %v320_v36  ;;  %v325_v41 = vsel %vm322_vm0, %v289_v30, %v320_v36  ;;  %v326_v42 = vsel %vm322_vm0, %v293_v31, %v320_v36 }
  0xcb   : > { %v327_v43 = vsel %vm322_vm0, %v297_v32, %v320_v36  ;;  %v328_v44 = vsel %vm322_vm0, %v301_v33, %v320_v36  ;;  %v329_v45 = vsel %vm322_vm0, %v305_v34, %v320_v36  ;;  %v330_v46 = vsel %vm322_vm0, %v309_v35, %v320_v36 }
  0xcc   : > { %v331_v47 = vcombine.low %v323_v39, %v325_v41  ;;  %v332_v48 = vcombine.high %v323_v39, %v325_v41  ;;  %v347_v49 = vcombine.low %v324_v40, %v326_v42  ;;  %v348_v50 = vcombine.high %v324_v40, %v326_v42 }
  0xcd   : > { %v363_v51 = vcombine.low %v327_v43, %v329_v45  ;;  %v364_v52 = vcombine.high %v327_v43, %v329_v45  ;;  %v379_v53 = vcombine.low %v328_v44, %v330_v46  ;;  %v380_v54 = vcombine.high %v328_v44, %v330_v46 }
  0xce   : > { %v339_v55 = vrot.slane %v331_v47, %v338_v37  ;;  %v355_v56 = vrot.slane %v347_v49, %v338_v37  ;;  %v346_v57 = vrot.slane %v332_v48, %v338_v37  ;;  %v362_v58 = vrot.slane %v348_v50, %v338_v37 }
  0xcf   : > { %v371_v59 = vrot.slane %v363_v51, %v338_v37  ;;  %v387_v60 = vrot.slane %v379_v53, %v338_v37  ;;  %v378_v61 = vrot.slane %v364_v52, %v338_v37  ;;  %v394_v62 = vrot.slane %v380_v54, %v338_v37 }
  0xd0   : > { %v396_v63 = vcombine.high %v339_v55, %v355_v56  ;;  %v395_v0 = vcombine.low %v339_v55, %v355_v56  ;;  %v411_v1 = vcombine.low %v346_v57, %v362_v58  ;;  %v412_v2 = vcombine.high %v346_v57, %v362_v58 }
  0xd1   : > { %v428_v3 = vcombine.high %v371_v59, %v387_v60  ;;  %v427_v4 = vcombine.low %v371_v59, %v387_v60  ;;  %v443_v5 = vcombine.low %v378_v61, %v394_v62  ;;  %v444_v6 = vcombine.high %v378_v61, %v394_v62 }
  0xd2   : > { %v410_v7 = vrot.slane %v396_v63, %v402_v38  ;;  %v403_v8 = vrot.slane %v395_v0, %v402_v38  ;;  %v419_v9 = vrot.slane %v411_v1, %v402_v38  ;;  %v426_v10 = vrot.slane %v412_v2, %v402_v38 }
  0xd3   : > { %v442_v11 = vrot.slane %v428_v3, %v402_v38  ;;  %v435_v12 = vrot.slane %v427_v4, %v402_v38  ;;  %v451_v13 = vrot.slane %v443_v5, %v402_v38  ;;  %v458_v14 = vrot.slane %v444_v6, %v402_v38 }
  0xd5   : > { %v462_v15 = vcombine.high %v410_v7, %v442_v11  ;;  %v461_v16 = vcombine.low %v410_v7, %v442_v11  ;;  %v460_v17 = vcombine.high %v403_v8, %v435_v12  ;;  %v459_v18 = vcombine.low %v403_v8, %v435_v12 }
  0xd6   : > { %v463_v19 = vcombine.low %v419_v9, %v451_v13  ;;  %v465_v20 = vcombine.low %v426_v10, %v458_v14  ;;  %v464_v21 = vcombine.high %v419_v9, %v451_v13  ;;  %v466_v22 = vcombine.high %v426_v10, %v458_v14 }
  0xd7   : > { %472 = vrot.lane.b32.xlu1 %v462_v15, %s867_s21  ;;  %468 = vrot.lane.b32.xlu0 %v460_v17, %s867_s21 }
  0xdb   : > { %476 = vrot.lane.b32.xlu1 %v464_v21, %s867_s21  ;;  %480 = vrot.lane.b32.xlu0 %v466_v22, %s867_s21 }
 0x149   : > { %v473_v23 = vpop.permute.xlu1 %472  ;;  %v469_v24 = vpop.permute.xlu0 %468 }
 0x14a   : > { %v485_v25 = vsel %vm483_vm1, %v461_v16, %v473_v23  ;;  %v484_v26 = vsel %vm483_vm1, %v459_v18, %v469_v24 }
 0x14b   : > { %489 = vst [vmem:[%s224_s20 + $0x8] sm:$0xff] %v485_v25  ;;  %488 = vst [vmem:[%s224_s20] sm:$0xff] %v484_v26 }
 0x14d   : > { %v477_v27 = vpop.permute.xlu1 %476  ;;  %v481_v28 = vpop.permute.xlu0 %480 }
 0x14e   : > { %v486_v29 = vsel %vm483_vm1, %v463_v19, %v477_v27  ;;  %v487_v30 = vsel %vm483_vm1, %v465_v20, %v481_v28 }
 0x14f   : > { %490 = vst [vmem:[%s224_s20 + $0x10] sm:$0xff] %v486_v29  ;;  %491 = vst [vmem:[%s224_s20 + $0x18] sm:$0xff] %v487_v30 }
 0x150   : > { %786 = shalt.err (!%p783_p2)
}
 0x151   : > { %s787_s15 = scalar_lea.hbm %s1064_s25, 512  ;;  %s791_s5 = scalar_lea.hbm %s1115_s2, 1024 }
 0x152   : > { %p788_p9 = scmp.ne.s32.totalorder %s1064_s25, %s787_s15  ;;  %p792_p6 = scmp.lt.u32.totalorder %s1064_s25, %s1115_s2 }
 0x153   : > { %p793_p13 = scmp.lt.u32.totalorder %s791_s5, %s787_s15  ;;  %p795_p8 = scmp.lt.u32.totalorder %s787_s15, %s1064_s25 }
 0x154   : > { %p789_p11 = pnand %p788_p9, %p1128_p0 }
 0x155   : > { %p794_p5 = por %p793_p13, %p792_p6 }
 0x156   : > { %p790_p3 = pneg %p789_p11 }
 0x157   : > { %p796_p7 = por %p795_p8, %p794_p5 }
 0x159   : > { %p797_p4 = pnand %p796_p7, %p790_p3 }
 0x15b   : > { %800 = shalt.err (!%p797_p4)
}
 0x15c   : > { %644 = dma.vmem_to_hbm [thread:$0]  (%p1128_p0), %s1066_s27, 512, %s1064_s25, %s493_s12  }
 0x15d PF: > { %s523_s21 = sand.u32 1, %s839_s9   ;;  %p1129_p10 = scmp.ne.s32.totalorder %s1121_s24, 0 }
 0x15e   : > { %p1130_p12 = scmp.ge.s32.totalorder %s859_s14, 2  ;;  %s524_s19 = scalar_lea.sflag [#allocation4], %s523_s21 }
 0x160   : > { %p654_p1 = pnand %p1130_p12, %p1129_p10 }
 0x162   : > { %834 = dma.done.wait (!%p654_p1), %s524_s19, 512  }
 0x163   : > { %836 = vsyncadd (!%p654_p1), %s524_s19, 4294966784  ;;  %s21_s14 = sadd.s32 1, %s859_s14   ;;  %s1131_s9 = smov %s843_s10 }
 0x164   : > { %p18_p2 = scmp.ge.s32.totalorder %s21_s14, 4   ;;  %s1132_s10 = smov %s847_s11 }
 0x165   : > { %s1133_s11 = smov %s940_s23  ;;  %s1134_s12 = smov %s855_s13 }
 0x166   : > { %s1135_s13 = smov %s1137_s17  ;;  %20 = sbr.rel (!%p18_p2) target bundleno = 8 (0x8), region = 86 }
 0x16d   :  { %529 = vsyncpa [#allocation3], 1 }
 0x16e   :  { %531 = vsyncpa [#allocation3 + $0x1], 1 }
 0x16f   :  { %532 = vsyncpa [#allocation6], 1 }
 0x170   :  { %534 = vsyncpa [#allocation6 + $0x1], 1 }
 0x171   :  { %535 = vsyncpa [#allocation4], 1 }
 0x172   :  { %537 = vsyncpa [#allocation4 + $0x1], 1 }

</bundles_post_ra>
